<compile_context>
chip_gen: v6e
topology: v6e:2x2x1
jax: 0.10.0
libtpu: 0.0.40
codegen_flags: <defaults>
</compile_context>

<pallas_src>
import jax
import jax.numpy as jnp
from jax.experimental import pallas as pl
from jax.experimental.pallas import tpu as pltpu  # noqa: F401  (TPU backend)


def _round_up(x: int, m: int) -> int:
    return ((x + m - 1) // m) * m


# ---------------------------------------------------------------------------
# One-time parameter preparation (hoisted out of the per-call hot path).
# ---------------------------------------------------------------------------
def prepare_params(w1, b1, w2, b2):
    """Pad the hidden dim to a lane multiple and cast weights to bf16 ONCE.

    Weights are stored (in_features, out_features) like nn.Linear.T.  The
    hidden dim is padded to a multiple of 128 so the intermediate activation
    is lane-dense; padded b1 columns / w2 rows are zero so they contribute
    nothing.  D and E are left unpadded (full-array block specs are legal for
    any shape, and E stays 1:1 with what the caller needs).
    """
    D, HID = w1.shape
    E = w2.shape[1]
    Hp = max(128, _round_up(HID, 128))

    w1_p = jnp.zeros((D, Hp), jnp.bfloat16).at[:, :HID].set(
        w1.astype(jnp.bfloat16))
    b1_p = jnp.zeros((1, Hp), jnp.float32).at[:, :HID].set(
        b1.reshape(1, HID).astype(jnp.float32))
    w2_p = jnp.zeros((Hp, E), jnp.bfloat16).at[:HID, :].set(
        w2.astype(jnp.bfloat16))
    b2_p = b2.reshape(1, E).astype(jnp.float32)
    return w1_p, b1_p, w2_p, b2_p


# ---------------------------------------------------------------------------
# Kernels
# ---------------------------------------------------------------------------
def _embed_math(x_f32, w1, b1, w2, b2):
    # Layer 1: bf16 MXU matmul, f32 accumulation, f32 bias + ReLU on the VPU.
    h = jnp.dot(x_f32.astype(jnp.bfloat16), w1,
                preferred_element_type=jnp.float32)
    h = jnp.maximum(h + b1, 0.0)
    # Layer 2: feed the MXU bf16 again, accumulate f32, add bias in f32.
    o = jnp.dot(h.astype(jnp.bfloat16), w2,
                preferred_element_type=jnp.float32)
    return o + b2


def _siamese_kernel(x1_ref, x2_ref, w1_ref, b1_ref, w2_ref, b2_ref,
                    o1_ref, o2_ref):
    w1 = w1_ref[...]
    b1 = b1_ref[...]
    w2 = w2_ref[...]
    b2 = b2_ref[...]
    o1_ref[...] = _embed_math(x1_ref[...], w1, b1, w2, b2)
    o2_ref[...] = _embed_math(x2_ref[...], w1, b1, w2, b2)


def _embed_kernel(x_ref, w1_ref, b1_ref, w2_ref, b2_ref, o_ref):
    o_ref[...] = _embed_math(x_ref[...], w1_ref[...], b1_ref[...],
                             w2_ref[...], b2_ref[...])


def _full_spec(a):
    # Whole-array block, grid-less call (index_map takes no grid args).
    return pl.BlockSpec(a.shape, lambda: (0,) * a.ndim)


# ---------------------------------------------------------------------------
# Wrappers (keep wrapper-side XLA ops to the bare minimum: just reshapes).
# ---------------------------------------------------------------------------
def siamese_forward(x1, x2, prepared_params):
    """SiameseNet.forward: one fused, grid-less pallas_call for both branches."""
    w1_p, b1_p, w2_p, b2_p = prepared_params
    D, Hp = w1_p.shape
    E = w2_p.shape[1]
    B1, B2 = x1.shape[0], x2.shape[0]

    f1 = x1.reshape(B1, -1)          # metadata-only reshape, no copy
    f2 = x2.reshape(B2, -1)

    flops = 2 * (B1 + B2) * (D * Hp + Hp * E)
    bytes_accessed = ((f1.size + f2.size) * 4      # f32 activations in
                      + (w1_p.size + w2_p.size) * 2  # bf16 weights
                      + (b1_p.size + b2_p.size) * 4  # f32 biases
                      + (B1 + B2) * E * 4)           # f32 embeddings out

    o1, o2 = pl.pallas_call(
        _siamese_kernel,
        out_shape=(jax.ShapeDtypeStruct((B1, E), jnp.float32),
                   jax.ShapeDtypeStruct((B2, E), jnp.float32)),
        in_specs=[_full_spec(f1), _full_spec(f2), _full_spec(w1_p),
                  _full_spec(b1_p), _full_spec(w2_p), _full_spec(b2_p)],
        out_specs=(pl.BlockSpec((B1, E), lambda: (0, 0)),
                   pl.BlockSpec((B2, E), lambda: (0, 0))),
        cost_estimate=pl.CostEstimate(
            flops=flops, transcendentals=0, bytes_accessed=bytes_accessed),
    )(f1, f2, w1_p, b1_p, w2_p, b2_p)
    return o1, o2


def get_embedding(x, prepared_params):
    """SiameseNet.get_embedding: single-branch embedding."""
    w1_p, b1_p, w2_p, b2_p = prepared_params
    D, Hp = w1_p.shape
    E = w2_p.shape[1]
    B = x.shape[0]
    f = x.reshape(B, -1)

    flops = 2 * B * (D * Hp + Hp * E)
    bytes_accessed = (f.size * 4 + (w1_p.size + w2_p.size) * 2
                      + (b1_p.size + b2_p.size) * 4 + B * E * 4)

    return pl.pallas_call(
        _embed_kernel,
        out_shape=jax.ShapeDtypeStruct((B, E), jnp.float32),
        in_specs=[_full_spec(f), _full_spec(w1_p), _full_spec(b1_p),
                  _full_spec(w2_p), _full_spec(b2_p)],
        out_specs=pl.BlockSpec((B, E), lambda: (0, 0)),
        cost_estimate=pl.CostEstimate(
            flops=flops, transcendentals=0, bytes_accessed=bytes_accessed),
    )(f, w1_p, b1_p, w2_p, b2_p)


# ---------------------------------------------------------------------------
# References (pure JAX) for correctness checks
# ---------------------------------------------------------------------------
def _reference_embed_f32(x_flat, w1, b1, w2, b2):
    h = jnp.maximum(x_flat @ w1 + b1.reshape(1, -1), 0.0)
    return h @ w2 + b2.reshape(1, -1)


def _reference_embed_bf16(x_flat, w1, b1, w2, b2):
    h = jnp.dot(x_flat.astype(jnp.bfloat16), w1.astype(jnp.bfloat16),
                preferred_element_type=jnp.float32)
    h = jnp.maximum(h + b1.reshape(1, -1).astype(jnp.float32), 0.0)
    o = jnp.dot(h.astype(jnp.bfloat16), w2.astype(jnp.bfloat16),
                preferred_element_type=jnp.float32)
    return o + b2.reshape(1, -1).astype(jnp.float32)


if __name__ == "__main__":
    # Small shapes consistent with an NCHW image input: batch=2, channels=4,
    # spatial=16x16 -> flattened feature dim D = 4*16*16 = 1024.
    B, C, H, W = 2, 4, 16, 16
    D = C * H * W
    HID, EMB = 128, 32

    key = jax.random.PRNGKey(0)
    k_x1, k_x2, k_w1, k_b1, k_w2, k_b2 = jax.random.split(key, 6)

    x1 = jax.random.normal(k_x1, (B, C, H, W), dtype=jnp.float32)
    x2 = jax.random.normal(k_x2, (B, C, H, W), dtype=jnp.float32)

    # Deterministic synthetic parameters (nn.Linear equivalent layout:
    # weights stored (in_features, out_features)).
    w1 = jax.random.normal(k_w1, (D, HID), dtype=jnp.float32) * 0.02
    b1 = jax.random.normal(k_b1, (1, HID), dtype=jnp.float32) * 0.01
    w2 = jax.random.normal(k_w2, (HID, EMB), dtype=jnp.float32) * 0.02
    b2 = jax.random.normal(k_b2, (1, EMB), dtype=jnp.float32) * 0.01

    # One-time weight preparation (hoisted out of the per-call hot path).
    prepared = prepare_params(w1, b1, w2, b2)
    jax.block_until_ready(prepared)

    out1, out2 = jax.jit(siamese_forward)(x1, x2, prepared)
    jax.block_until_ready((out1, out2))

    assert out1.shape == (B, EMB) and out2.shape == (B, EMB)

    # Tight check against a pure-JAX bf16/f32-accum reference (same math path).
    ref1_bf = _reference_embed_bf16(x1.reshape(B, -1), w1, b1, w2, b2)
    ref2_bf = _reference_embed_bf16(x2.reshape(B, -1), w1, b1, w2, b2)
    assert jnp.allclose(out1, ref1_bf, atol=2e-3, rtol=2e-3)
    assert jnp.allclose(out2, ref2_bf, atol=2e-3, rtol=2e-3)

    # Looser check against the full-f32 reference (bf16 input rounding).
    ref1 = _reference_embed_f32(x1.reshape(B, -1), w1, b1, w2, b2)
    ref2 = _reference_embed_f32(x2.reshape(B, -1), w1, b1, w2, b2)
    assert jnp.allclose(out1, ref1, atol=3e-2, rtol=3e-2)
    assert jnp.allclose(out2, ref2, atol=3e-2, rtol=3e-2)

    # get_embedding path (single branch) also works and matches branch 1.
    emb1 = jax.jit(get_embedding)(x1, prepared)
    jax.block_until_ready(emb1)
    assert jnp.allclose(emb1, out1, atol=1e-5, rtol=1e-5)

    print("KERNEL_OK")
</pallas_src>

<mosaic_0001>
module attributes {stable_mosaic.version = 11 : i64} {
  func.func @_siamese_kernel(%arg0: memref<2x1024xf32, #tpu.memory_space<vmem>>, %arg1: memref<2x1024xf32, #tpu.memory_space<vmem>>, %arg2: memref<1024x128xbf16, #tpu.memory_space<vmem>>, %arg3: memref<1x128xf32, #tpu.memory_space<vmem>>, %arg4: memref<128x32xbf16, #tpu.memory_space<vmem>>, %arg5: memref<1x32xf32, #tpu.memory_space<vmem>>, %arg6: memref<2x32xf32, #tpu.memory_space<vmem>>, %arg7: memref<2x32xf32, #tpu.memory_space<vmem>>) attributes {dimension_semantics = [], scalar_prefetch = 0 : i64, scratch_operands = 0 : i64, tpu.core_type = #tpu.core_type<tc>} {
    %c0 = arith.constant 0 : index
    %c0_0 = arith.constant 0 : index
    %0 = vector.load %arg2[%c0, %c0_0] : memref<1024x128xbf16, #tpu.memory_space<vmem>>, vector<1024x128xbf16>
    %c0_1 = arith.constant 0 : index
    %c0_2 = arith.constant 0 : index
    %1 = vector.load %arg3[%c0_1, %c0_2] : memref<1x128xf32, #tpu.memory_space<vmem>>, vector<1x128xf32>
    %c0_3 = arith.constant 0 : index
    %c0_4 = arith.constant 0 : index
    %2 = vector.load %arg4[%c0_3, %c0_4] : memref<128x32xbf16, #tpu.memory_space<vmem>>, vector<128x32xbf16>
    %c0_5 = arith.constant 0 : index
    %c0_6 = arith.constant 0 : index
    %3 = vector.load %arg5[%c0_5, %c0_6] : memref<1x32xf32, #tpu.memory_space<vmem>>, vector<1x32xf32>
    %c0_7 = arith.constant 0 : index
    %c0_8 = arith.constant 0 : index
    %4 = vector.load %arg0[%c0_7, %c0_8] : memref<2x1024xf32, #tpu.memory_space<vmem>>, vector<2x1024xf32>
    %5 = arith.truncf %4 : vector<2x1024xf32> to vector<2x1024xbf16>
    %cst = arith.constant dense<0.000000e+00> : vector<2x128xf32>
    %6 = tpu.matmul %5, %0, %cst {dimension_numbers = #tpu.dot_dimension_numbers<[1], [0], [0], [1], [0, 0, 1, 1], [], []>} : vector<2x1024xbf16>, vector<1024x128xbf16>, vector<2x128xf32> -> vector<2x128xf32>
    %7 = vector.broadcast %1 : vector<1x128xf32> to vector<2x128xf32>
    %8 = arith.addf %6, %7 : vector<2x128xf32>
    %cst_9 = arith.constant 0.000000e+00 : f32
    %9 = vector.broadcast %cst_9 : f32 to vector<2x128xf32>
    %10 = arith.maximumf %8, %9 : vector<2x128xf32>
    %11 = arith.truncf %10 : vector<2x128xf32> to vector<2x128xbf16>
    %cst_10 = arith.constant dense<0.000000e+00> : vector<2x32xf32>
    %12 = tpu.matmul %11, %2, %cst_10 {dimension_numbers = #tpu.dot_dimension_numbers<[1], [0], [0], [1], [0, 0, 1, 1], [], []>} : vector<2x128xbf16>, vector<128x32xbf16>, vector<2x32xf32> -> vector<2x32xf32>
    %13 = vector.broadcast %3 : vector<1x32xf32> to vector<2x32xf32>
    %14 = arith.addf %12, %13 : vector<2x32xf32>
    %c0_11 = arith.constant 0 : index
    %c0_12 = arith.constant 0 : index
    %15 = vector.load %arg6[%c0_11, %c0_12] : memref<2x32xf32, #tpu.memory_space<vmem>>, vector<2x32xf32>
    tpu.vector_store %arg6[%c0_11, %c0_12], %14 {strides = array<i32>} : memref<2x32xf32, #tpu.memory_space<vmem>>, vector<2x32xf32>,
    %c0_13 = arith.constant 0 : index
    %c0_14 = arith.constant 0 : index
    %16 = vector.load %arg1[%c0_13, %c0_14] : memref<2x1024xf32, #tpu.memory_space<vmem>>, vector<2x1024xf32>
    %17 = arith.truncf %16 : vector<2x1024xf32> to vector<2x1024xbf16>
    %cst_15 = arith.constant dense<0.000000e+00> : vector<2x128xf32>
    %18 = tpu.matmul %17, %0, %cst_15 {dimension_numbers = #tpu.dot_dimension_numbers<[1], [0], [0], [1], [0, 0, 1, 1], [], []>} : vector<2x1024xbf16>, vector<1024x128xbf16>, vector<2x128xf32> -> vector<2x128xf32>
    %19 = vector.broadcast %1 : vector<1x128xf32> to vector<2x128xf32>
    %20 = arith.addf %18, %19 : vector<2x128xf32>
    %cst_16 = arith.constant 0.000000e+00 : f32
    %21 = vector.broadcast %cst_16 : f32 to vector<2x128xf32>
    %22 = arith.maximumf %20, %21 : vector<2x128xf32>
    %23 = arith.truncf %22 : vector<2x128xf32> to vector<2x128xbf16>
    %cst_17 = arith.constant dense<0.000000e+00> : vector<2x32xf32>
    %24 = tpu.matmul %23, %2, %cst_17 {dimension_numbers = #tpu.dot_dimension_numbers<[1], [0], [0], [1], [0, 0, 1, 1], [], []>} : vector<2x128xbf16>, vector<128x32xbf16>, vector<2x32xf32> -> vector<2x32xf32>
    %25 = vector.broadcast %3 : vector<1x32xf32> to vector<2x32xf32>
    %26 = arith.addf %24, %25 : vector<2x32xf32>
    %c0_18 = arith.constant 0 : index
    %c0_19 = arith.constant 0 : index
    %27 = vector.load %arg7[%c0_18, %c0_19] : memref<2x32xf32, #tpu.memory_space<vmem>>, vector<2x32xf32>
    tpu.vector_store %arg7[%c0_18, %c0_19], %26 {strides = array<i32>} : memref<2x32xf32, #tpu.memory_space<vmem>>, vector<2x32xf32>,
    return
  }
}

</mosaic_0001>

<bundles_post_ra>
// kernel: siamese_forward.1
= control target key start
LH: loop header
LB: loop body
LE: loop exit
PB: predicated region body
PF: predicated region fallthrough
CT: control target
= control target key end

     0   :  { %13 = vsyncpa [#allocation3], 0  ;;  %s2035_s0 = inlined_call_operand.vmem [shape: f32[2,1024], index: 0, kind: input, shape index: {}]   ;;  %s2036_s1 = inlined_call_operand.vmem [shape: f32[2,1024], index: 1, kind: input, shape index: {}]   ;;  %s2037_s2 = inlined_call_operand.hbm [shape: bf16[1024,128], index: 2, kind: input, shape index: {}]   ;;  %s2038_s3 = inlined_call_operand.vmem [shape: f32[1,128], index: 3, kind: input, shape index: {}]   ;;  %s2039_s4 = inlined_call_operand.vmem [shape: bf16[128,32], index: 4, kind: input, shape index: {}]   ;;  %s2040_s5 = inlined_call_operand.vmem [shape: f32[1,32], index: 5, kind: input, shape index: {}]   ;;  %s2041_s6 = inlined_call_operand.hbm [shape: f32[2,32], index: 6, kind: output, shape index: {0}]   ;;  %s2042_s7 = inlined_call_operand.hbm [shape: f32[2,32], index: 7, kind: output, shape index: {1}]  }
   0x1   :  { %14 = vsyncpa [#allocation4], 0 }
   0x2   :  { %15 = vsyncpa [#allocation7], 0  ;;  %s1634_s24 = smov [#allocation2]  }
   0x3   :  { %s25_s25 = sshll.u32 %s1634_s24, 4  ;;  %s26_s25 = int_to_ptr.vmem [resolvable:$true] %s25_s25 }
   0x4   :  { %s1576_s26 = scalar_lea.vmem %s26_s25, 8192  ;;  %p1581_p1 = scmp.lt.s32.totalorder %s26_s25, %s26_s25 }
   0x5   :  { %p1577_p0 = scmp.ne.s32.totalorder %s26_s25, %s1576_s26  ;;  %p1582_p2 = scmp.lt.s32.totalorder %s1576_s26, %s1576_s26 }
   0x7   :  { %p1583_p3 = por %p1582_p2, %p1581_p1 }
   0x9   :  { %p1584_p4 = pnand %p1583_p3, %p1577_p0 }
   0xb   :  { %1587 = shalt.err (!%p1584_p4)
}
   0xc   :  { %s1635_s27 = smov 64   ;;  %s1636_s28 = smov 4  }
   0xd   :  { %31 = dma.hbm_to_vmem [thread:$0]  %s2037_s2, 8192, %s26_s25, [#allocation3], %s1635_s27, %s1635_s27, %s1636_s28  }
   0xe   :  { %1628 = dma.done.wait [#allocation3], 8192  }
   0xf   :  { %1629 = vsyncadd [#allocation3], 4294959104  ;;  %v1685_v0 = vld [vmem:[#allocation2 + $0x78] sm:$0xff]   ;;  %v1696_v4 = vld [vmem:[#allocation2 + $0x70] sm:$0xff]   ;;  %v1637_v22 = vmov 1983009808   ;;  %v196_v24 = vlaneseq }
  0x10   :  { %v1687_v1 = vld [vmem:[#allocation2 + $0xf8] sm:$0xff]   ;;  %1250 = vmatprep.subr.bf16.mxu0 %v1685_v0  ;;  %v1699_v5 = vld [vmem:[#allocation2 + $0xf0] sm:$0xff]   ;;  %v1708_v8 = vld [vmem:[#allocation2 + $0x68] sm:$0xff]   ;;  %v194_v23 = vunpack.c.l.s4 %v1637_v22  ;;  %vm1639_vm0 = vmmov 0   ;;  %vm888_vm1 = vcmask 254976  }
  0x11   :  { %v1690_v2 = vld [vmem:[#allocation2 + $0x38] sm:$0xff]   ;;  %1272 = vmatprep.subr.bf16.mxu1 %v1687_v1  ;;  %v1702_v6 = vld [vmem:[#allocation2 + $0x30] sm:$0xff]   ;;  %v1711_v9 = vld [vmem:[#allocation2 + $0xe8] sm:$0xff]   ;;  %v197_v30 = vshrl.u32 %v196_v24, 7 }
  0x12   :  { %v1693_v3 = vld [vmem:[#allocation2 + $0xb8] sm:$0xff]   ;;  %1251 = vmatpush3.bf16.msra.mxu0 %v1690_v2  ;;  %v1705_v7 = vld [vmem:[#allocation2 + $0xb0] sm:$0xff]   ;;  %v1714_v10 = vld [vmem:[#allocation2 + $0x28] sm:$0xff]   ;;  %v195_v29 = vunpack.c.0.s8 %v194_v23 }
  0x13   :  { %1273 = vmatpush3.bf16.msra.mxu1 %v1693_v3  ;;  %1252 = vmatprep.subr.bf16.mxu0 %v1696_v4  ;;  %v1717_v11 = vld [vmem:[#allocation2 + $0xa8] sm:$0xff]   ;;  %v1720_v12 = vld [vmem:[#allocation2 + $0x60] sm:$0xff]   ;;  %v1732_v16 = vld [vmem:[#allocation2 + $0x58] sm:$0xff]  }
  0x14   :  { %1274 = vmatprep.subr.bf16.mxu1 %v1699_v5  ;;  %v1723_v13 = vld [vmem:[#allocation2 + $0xe0] sm:$0xff]   ;;  %v1735_v17 = vld [vmem:[#allocation2 + $0xd8] sm:$0xff]   ;;  %v1744_v20 = vld [vmem:[#allocation2 + $0x50] sm:$0xff]   ;;  %v1773_v35 = vsub.s32 %v195_v29, %v197_v30 }
  0x15   :  { %v1726_v14 = vld [vmem:[#allocation2 + $0x20] sm:$0xff]   ;;  %v1738_v18 = vld [vmem:[#allocation2 + $0x18] sm:$0xff]   ;;  %v1747_v21 = vld [vmem:[#allocation2 + $0xd0] sm:$0xff]  }
  0x16   :  { %1253 = vmatpush3.bf16.msra.mxu0 %v1702_v6  ;;  %v1729_v15 = vld [vmem:[#allocation2 + $0xa0] sm:$0xff]   ;;  %v1741_v19 = vld [vmem:[#allocation2 + $0x98] sm:$0xff]   ;;  %v1750_v25 = vld [vmem:[#allocation2 + $0x10] sm:$0xff]  }
  0x17   :  { %1275 = vmatpush3.bf16.msra.mxu1 %v1705_v7  ;;  %1254 = vmatprep.subr.bf16.mxu0 %v1708_v8  ;;  %v1753_v26 = vld [vmem:[#allocation2 + $0x90] sm:$0xff]   ;;  %v1756_v27 = vld [vmem:[#allocation2 + $0x48] sm:$0xff]   ;;  %v1768_v33 = vld [vmem:[#allocation2 + $0x40] sm:$0xff]  }
  0x18   :  { %1276 = vmatprep.subr.bf16.mxu1 %v1711_v9  ;;  %v1759_v28 = vld [vmem:[#allocation2 + $0xc8] sm:$0xff]   ;;  %v1771_v34 = vld [vmem:[#allocation2 + $0xc0] sm:$0xff]   ;;  %v1787_v41 = vld [vmem:[#allocation2 + $0x178] sm:$0xff]  }
  0x19   :  { %v1762_v31 = vld [vmem:[#allocation2 + $0x8] sm:$0xff]   ;;  %v1776_v36 = vld [vmem:[#allocation2] sm:$0xff]   ;;  %v1789_v42 = vld [vmem:[#allocation2 + $0x1f8] sm:$0xff]  }
  0x1a   :  { %1255 = vmatpush3.bf16.msra.mxu0 %v1714_v10  ;;  %v1765_v32 = vld [vmem:[#allocation2 + $0x88] sm:$0xff]   ;;  %v1779_v37 = vld [vmem:[#allocation2 + $0x80] sm:$0xff]   ;;  %v1794_v46 = vld [vmem:[#allocation2 + $0x138] sm:$0xff]  }
  0x1b   :  { %1277 = vmatpush3.bf16.msra.mxu1 %v1717_v11  ;;  %1256 = vmatprep.subr.bf16.mxu0 %v1720_v12  ;;  %v188_v38 = vld [vmem:[%s2035_s0] sm:$0xff]  ;;  %v1796_v49 = vld [vmem:[#allocation2 + $0x1b8] sm:$0xff]   ;;  %v1798_v51 = vld [vmem:[#allocation2 + $0x170] sm:$0xff]  }
  0x1c   :  { %1278 = vmatprep.subr.bf16.mxu1 %v1723_v13  ;;  %v199_v39 = vrot.slane %v188_v38, %v1773_v35  ;;  %v192_v40 = vcombine.high %v188_v38, %v188_v38  ;;  %v1800_v53 = vld [vmem:[#allocation2 + $0x1f0] sm:$0xff]   ;;  %v1808_v56 = vld [vmem:[#allocation2 + $0x168] sm:$0xff]   ;;  %v1820_v60 = vld [vmem:[#allocation2 + $0x160] sm:$0xff]  }
  0x1d   :  { %2054 = vst [vmem:[#allocation11_spill] sm:$0xff] %v1800_v53  ;;  %v1802_v54 = vld [vmem:[#allocation2 + $0x130] sm:$0xff]   ;;  %v1811_v57 = vld [vmem:[#allocation2 + $0x1e8] sm:$0xff]   ;;  %v1823_v61 = vld [vmem:[#allocation2 + $0x1e0] sm:$0xff]  }
  0x1e   :  { %1257 = vmatpush3.bf16.msra.mxu0 %v1726_v14  ;;  %v207_v43 = vcombine.high %v199_v39, %v199_v39  ;;  %v206_v44 = vrot.slane %v192_v40, %v1773_v35  ;;  %v234_v45 = vpack.c.bf16 %v199_v39, %v199_v39  ;;  %v1805_v55 = vld [vmem:[#allocation2 + $0x1b0] sm:$0xff]   ;;  %2056 = vst [vmem:[#allocation13_spill] sm:$0xff] %v1811_v57  ;;  %v1814_v58 = vld [vmem:[#allocation2 + $0x128] sm:$0xff]   ;;  %2058 = vst [vmem:[#allocation15_spill] sm:$0xff] %v1823_v61 }
  0x1f   :  { %1279 = vmatpush3.bf16.msra.mxu1 %v1729_v15  ;;  %1258 = vmatprep.subr.bf16.mxu0 %v1732_v16  ;;  %2055 = vst [vmem:[#allocation12_spill] sm:$0xff] %v1805_v55  ;;  %v1817_v59 = vld [vmem:[#allocation2 + $0x1a8] sm:$0xff]   ;;  %v1826_v62 = vld [vmem:[#allocation2 + $0x120] sm:$0xff]   ;;  %v1832_v22 = vld [vmem:[#allocation2 + $0x158] sm:$0xff]  }
  0x20   :  { %1280 = vmatprep.subr.bf16.mxu1 %v1735_v17  ;;  %v235_v47 = vpack.c.bf16 %v207_v43, %v207_v43  ;;  %v208_v48 = vcombine.high %v206_v44, %v206_v44  ;;  %v236_v50 = vpack.c.bf16 %v206_v44, %v206_v44  ;;  %2057 = vst [vmem:[#allocation14_spill] sm:$0xff] %v1817_v59  ;;  %v1829_v63 = vld [vmem:[#allocation2 + $0x1a0] sm:$0xff]   ;;  %v1835_v23 = vld [vmem:[#allocation2 + $0x1d8] sm:$0xff]   ;;  %v1844_v30 = vld [vmem:[#allocation2 + $0x150] sm:$0xff]  }
  0x21   :  { %2059 = vst [vmem:[#allocation16_spill] sm:$0xff] %v1829_v63  ;;  %2060 = vst [vmem:[#allocation17_spill] sm:$0xff] %v1835_v23  ;;  %v1838_v24 = vld [vmem:[#allocation2 + $0x118] sm:$0xff]   ;;  %v1847_v38 = vld [vmem:[#allocation2 + $0x1d0] sm:$0xff]  }
  0x22   :  { %1259 = vmatpush3.bf16.msra.mxu0 %v1738_v18  ;;  %664 = vmatprep.mubr.bf16.mxu0 %v235_v47  ;;  %v237_v52 = vpack.c.bf16 %v208_v48, %v208_v48  ;;  %v1841_v29 = vld [vmem:[#allocation2 + $0x198] sm:$0xff]   ;;  %2062 = vst [vmem:[#allocation19_spill] sm:$0xff] %v1847_v38  ;;  %v1850_v39 = vld [vmem:[#allocation2 + $0x110] sm:$0xff]   ;;  %v1856_v43 = vld [vmem:[#allocation2 + $0x148] sm:$0xff]  }
  0x23   :  { %1281 = vmatpush3.bf16.msra.mxu1 %v1741_v19  ;;  %1260 = vmatprep.subr.bf16.mxu0 %v1744_v20  ;;  %2061 = vst [vmem:[#allocation18_spill] sm:$0xff] %v1841_v29  ;;  %v1853_v40 = vld [vmem:[#allocation2 + $0x190] sm:$0xff]   ;;  %v1859_v44 = vld [vmem:[#allocation2 + $0x1c8] sm:$0xff]   ;;  %v1868_v48 = vld [vmem:[#allocation2 + $0x140] sm:$0xff]  }
  0x24   :  { %1282 = vmatprep.subr.bf16.mxu1 %v1747_v21  ;;  %704 = vmatprep.mubr.bf16.mxu1 %v237_v52  ;;  %2063 = vst [vmem:[#allocation20_spill] sm:$0xff] %v1853_v40  ;;  %2064 = vst [vmem:[#allocation21_spill] sm:$0xff] %v1859_v44  ;;  %v1865_v47 = vld [vmem:[#allocation2 + $0x188] sm:$0xff]   ;;  %v1874_v52 = vld [vmem:[#allocation2 + $0x100] sm:$0xff]  }
  0x26   :  { %1261 = vmatpush3.bf16.msra.mxu0 %v1750_v25 }
  0x27   :  { %1283 = vmatpush3.bf16.msra.mxu1 %v1753_v26  ;;  %1262 = vmatprep.subr.bf16.mxu0 %v1756_v27 }
  0x28   :  { %1284 = vmatprep.subr.bf16.mxu1 %v1759_v28 }
  0x2a   :  { %1263 = vmatpush3.bf16.msra.mxu0 %v1762_v31 }
  0x2b   :  { %1285 = vmatpush3.bf16.msra.mxu1 %v1765_v32  ;;  %1264 = vmatprep.subr.bf16.mxu0 %v1768_v33 }
  0x2c   :  { %1286 = vmatprep.subr.bf16.mxu1 %v1771_v34 }
  0x2e   :  { %1265 = vmatpush3.bf16.msra.mxu0 %v1776_v36 }
  0x2f   :  { %1287 = vmatpush3.bf16.msra.mxu1 %v1779_v37  ;;  %1294 = vmatprep.subr.bf16.mxu0 %v1787_v41 }
  0x30   :  { %1316 = vmatprep.subr.bf16.mxu1 %v1789_v42 }
  0x31   :  { %665 = vmatmul.mubr.bf16.vlgmr.msra.gmra.mxu0 %v234_v45  ;;  %v1862_v45 = vld [vmem:[#allocation2 + $0x108] sm:$0xff]  }
  0x32   :  { %1295 = vmatpush3.bf16.msra.mxu0 %v1794_v46  ;;  %705 = vmatmul.mubr.bf16.vlgmr.msra.gmra.mxu1 %v236_v50  ;;  %v1871_v50 = vld [vmem:[#allocation2 + $0x1c0] sm:$0xff]  }
  0x33   :  { %1296 = vmatprep.subr.bf16.mxu0 %v1798_v51  ;;  %1317 = vmatpush3.bf16.msra.mxu1 %v1796_v49 }
  0x34   :  { %1318 = vmatprep.subr.bf16.mxu1 %v1800_v53 }
  0x36   :  { %1297 = vmatpush3.bf16.msra.mxu0 %v1802_v54 }
  0x37   :  { %1298 = vmatprep.subr.bf16.mxu0 %v1808_v56  ;;  %1319 = vmatpush3.bf16.msra.mxu1 %v1805_v55 }
  0x38   :  { %1320 = vmatprep.subr.bf16.mxu1 %v1811_v57 }
  0x3a   :  { %1299 = vmatpush3.bf16.msra.mxu0 %v1814_v58 }
  0x3b   :  { %1300 = vmatprep.subr.bf16.mxu0 %v1820_v60  ;;  %1321 = vmatpush3.bf16.msra.mxu1 %v1817_v59 }
  0x3c   :  { %1322 = vmatprep.subr.bf16.mxu1 %v1823_v61 }
  0x3e   :  { %1301 = vmatpush3.bf16.msra.mxu0 %v1826_v62 }
  0x3f   :  { %1302 = vmatprep.subr.bf16.mxu0 %v1832_v22  ;;  %1323 = vmatpush3.bf16.msra.mxu1 %v1829_v63 }
  0x40   :  { %1324 = vmatprep.subr.bf16.mxu1 %v1835_v23 }
  0x42   :  { %1303 = vmatpush3.bf16.msra.mxu0 %v1838_v24 }
  0x43   :  { %1304 = vmatprep.subr.bf16.mxu0 %v1844_v30  ;;  %1325 = vmatpush3.bf16.msra.mxu1 %v1841_v29  ;;  %v1880_v29 = vld [vmem:[#allocation2 + $0x180] sm:$0xff]  }
  0x44   :  { %1326 = vmatprep.subr.bf16.mxu1 %v1847_v38  ;;  %v189_v38 = vld [vmem:[%s2035_s0 + $0x8] sm:$0xff] }
  0x45   :  { %v216_v23 = vrot.slane %v189_v38, %v1773_v35  ;;  %v209_v63 = vcombine.high %v189_v38, %v189_v38 }
  0x46   :  { %1305 = vmatpush3.bf16.msra.mxu0 %v1850_v39 }
  0x47   :  { %1306 = vmatprep.subr.bf16.mxu0 %v1856_v43  ;;  %1327 = vmatpush3.bf16.msra.mxu1 %v1853_v40  ;;  %v224_v40 = vcombine.high %v216_v23, %v216_v23  ;;  %v238_v61 = vpack.c.bf16 %v216_v23, %v216_v23 }
  0x48   :  { %1328 = vmatprep.subr.bf16.mxu1 %v1859_v44  ;;  %v223_v44 = vrot.slane %v209_v63, %v1773_v35 }
  0x49   :  { %v239_v59 = vpack.c.bf16 %v224_v40, %v224_v40 }
  0x4a   :  { %1307 = vmatpush3.bf16.msra.mxu0 %v1862_v45  ;;  %v225_v57 = vcombine.high %v223_v44, %v223_v44  ;;  %v240_v55 = vpack.c.bf16 %v223_v44, %v223_v44 }
  0x4b   :  { %1308 = vmatprep.subr.bf16.mxu0 %v1868_v48  ;;  %1329 = vmatpush3.bf16.msra.mxu1 %v1865_v47 }
  0x4c   :  { %1330 = vmatprep.subr.bf16.mxu1 %v1871_v50  ;;  %744 = vmatprep.mubr.bf16.mxu0 %v239_v59  ;;  %v241_v53 = vpack.c.bf16 %v225_v57, %v225_v57 }
  0x4e   :  { %1309 = vmatpush3.bf16.msra.mxu0 %v1874_v52  ;;  %784 = vmatprep.mubr.bf16.mxu1 %v241_v53 }
  0x4f   :  { %1331 = vmatpush3.bf16.msra.mxu1 %v1880_v29 }
  0x50   :  { %1347 = vmatprep.subr.bf16.mxu1 %v1685_v0  ;;  %v1558_v0 = vld [vmem:[%s2039_s4 + $0x38] sm:$0xff]  }
  0x51   :  { %745 = vmatmul.mubr.bf16.vlgmr.msra.gmra.mxu0 %v238_v61  ;;  %v1983_v61 = vld [vmem:[%s2038_s3] ss:$0 sm:$0xff] }
  0x52   :  { %785 = vmatmul.mubr.bf16.vlgmr.msra.gmra.mxu1 %v240_v55 }
  0x53   :  { %1348 = vmatpush3.bf16.msra.mxu1 %v1690_v2  ;;  %v1638_v2 = vmov 0.0  }
  0x54   :  { %1349 = vmatprep.subr.bf16.mxu1 %v1696_v4  ;;  %1444 = vmatprep.subr.bf16.mxu0 %v1638_v2  ;;  %v1559_v4 = vld [vmem:[%s2039_s4 + $0x30] sm:$0xff]  }
  0x55   :  { %1445 = vmatpush3.bf16.msra.mxu0 %v1558_v0  ;;  %1460 = vmatprep.mubr.msk.bf16.mxu0 %vm1639_vm0, %v1638_v2 }
  0x56   :  { %1446 = vmatprep.subr.bf16.mxu0 %v1638_v2 }
  0x57   :  { %1350 = vmatpush3.bf16.msra.mxu1 %v1702_v6  ;;  %v1560_v6 = vld [vmem:[%s2039_s4 + $0x28] sm:$0xff]  }
  0x58   :  { %1351 = vmatprep.subr.bf16.mxu1 %v1708_v8  ;;  %v1561_v8 = vld [vmem:[%s2039_s4 + $0x20] sm:$0xff]  }
  0x59   :  { %1447 = vmatpush3.bf16.msra.mxu0 %v1559_v4 }
  0x5a   :  { %1448 = vmatprep.subr.bf16.mxu0 %v1638_v2 }
  0x5b   :  { %1352 = vmatpush3.bf16.msra.mxu1 %v1714_v10  ;;  %v1562_v10 = vld [vmem:[%s2039_s4 + $0x18] sm:$0xff]  }
  0x5c   :  { %1353 = vmatprep.subr.bf16.mxu1 %v1720_v12  ;;  %v1563_v12 = vld [vmem:[%s2039_s4 + $0x10] sm:$0xff]  }
  0x5d   :  { %1449 = vmatpush3.bf16.msra.mxu0 %v1560_v6 }
  0x5e   :  { %1450 = vmatprep.subr.bf16.mxu0 %v1638_v2 }
  0x5f   :  { %1354 = vmatpush3.bf16.msra.mxu1 %v1726_v14  ;;  %v1564_v14 = vld [vmem:[%s2039_s4 + $0x8] sm:$0xff]  }
  0x60   :  { %1355 = vmatprep.subr.bf16.mxu1 %v1732_v16  ;;  %v1565_v16 = vld [vmem:[%s2039_s4] sm:$0xff]  }
  0x61   :  { %1451 = vmatpush3.bf16.msra.mxu0 %v1561_v8 }
  0x62   :  { %1452 = vmatprep.subr.bf16.mxu0 %v1638_v2 }
  0x63   :  { %1356 = vmatpush3.bf16.msra.mxu1 %v1738_v18  ;;  %v1941_v18 = vld [vmem:[%s2036_s1] sm:$0xff] }
  0x64   :  { %1357 = vmatprep.subr.bf16.mxu1 %v1744_v20  ;;  %v901_v20 = vrot.slane %v1941_v18, %v1773_v35 }
  0x65   :  { %1453 = vmatpush3.bf16.msra.mxu0 %v1562_v10 }
  0x66   :  { %1454 = vmatprep.subr.bf16.mxu0 %v1638_v2 }
  0x67   :  { %1358 = vmatpush3.bf16.msra.mxu1 %v1750_v25  ;;  %v909_v25 = vcombine.high %v901_v20, %v901_v20 }
  0x68   :  { %1359 = vmatprep.subr.bf16.mxu1 %v1756_v27 }
  0x69   :  { %1455 = vmatpush3.bf16.msra.mxu0 %v1563_v12  ;;  %v937_v27 = vpack.c.bf16 %v909_v25, %v909_v25 }
  0x6a   :  { %1456 = vmatprep.subr.bf16.mxu0 %v1638_v2 }
  0x6b   :  { %1360 = vmatpush3.bf16.msra.mxu1 %v1762_v31  ;;  %v936_v31 = vpack.c.bf16 %v901_v20, %v901_v20  ;;  %976 = vmatprep.mubr.bf16.mxu1 %v937_v27 }
  0x6c   :  { %1361 = vmatprep.subr.bf16.mxu1 %v1768_v33 }
  0x6d   :  { %1457 = vmatpush3.bf16.msra.mxu0 %v1564_v14 }
  0x6e   :  { %1458 = vmatprep.subr.bf16.mxu0 %v1638_v2 }
  0x6f   :  { %1362 = vmatpush3.bf16.msra.mxu1 %v1776_v36 }
  0x70   :  { %1391 = vmatprep.subr.bf16.mxu1 %v1787_v41 }
  0x71   :  { %1459 = vmatpush3.bf16.msra.mxu0 %v1565_v16 }
  0x72   :  { %1369 = vmatprep.subr.bf16.mxu0 %v1687_v1  ;;  %977 = vmatmul.mubr.bf16.vlgmr.msra.gmra.mxu1 %v936_v31  ;;  %v1963_v1 = vld [vmem:[%s2036_s1 + $0x8] sm:$0xff] }
  0x73   :  { %1392 = vmatpush3.bf16.msra.mxu1 %v1794_v46  ;;  %v918_v33 = vrot.slane %v1963_v1, %v1773_v35 }
  0x74   :  { %1393 = vmatprep.subr.bf16.mxu1 %v1798_v51 }
  0x75   :  { %v926_v36 = vcombine.high %v918_v33, %v918_v33  ;;  %v940_v46 = vpack.c.bf16 %v918_v33, %v918_v33 }
  0x77   :  { %1394 = vmatpush3.bf16.msra.mxu1 %v1802_v54  ;;  %v941_v41 = vpack.c.bf16 %v926_v36, %v926_v36 }
  0x78   :  { %1395 = vmatprep.subr.bf16.mxu1 %v1808_v56 }
  0x79   :  { %1056 = vmatprep.mubr.bf16.mxu1 %v941_v41 }
  0x7b   :  { %1396 = vmatpush3.bf16.msra.mxu1 %v1814_v58 }
  0x7c   :  { %1397 = vmatprep.subr.bf16.mxu1 %v1820_v60 }
  0x7f   :  { %1398 = vmatpush3.bf16.msra.mxu1 %v1826_v62  ;;  %v894_v62 = vcombine.high %v1941_v18, %v1941_v18 }
  0x80   :  { %1399 = vmatprep.subr.bf16.mxu1 %v1832_v22 }
  0x81   :  { %v908_v38 = vrot.slane %v894_v62, %v1773_v35 }
  0x83   :  { %1400 = vmatpush3.bf16.msra.mxu1 %v1838_v24 }
  0x84   :  { %1401 = vmatprep.subr.bf16.mxu1 %v1844_v30 }
  0x87   :  { %1402 = vmatpush3.bf16.msra.mxu1 %v1850_v39 }
  0x88   :  { %1403 = vmatprep.subr.bf16.mxu1 %v1856_v43 }
  0x8b   :  { %1404 = vmatpush3.bf16.msra.mxu1 %v1862_v45 }
  0x8c   :  { %1405 = vmatprep.subr.bf16.mxu1 %v1868_v48 }
  0x8f   :  { %1406 = vmatpush3.bf16.msra.mxu1 %v1874_v52 }
  0x90   :  { %1464 = vmatprep.subr.bf16.mxu1 %v1638_v2 }
  0x92   :  { %1057 = vmatmul.mubr.bf16.vlgmr.msra.gmra.mxu1 %v940_v46 }
  0x93   :  { %1465 = vmatpush3.bf16.msra.mxu1 %v1558_v0  ;;  %1480 = vmatprep.mubr.msk.bf16.mxu1 %vm1639_vm0, %v1638_v2 }
  0x94   :  { %1466 = vmatprep.subr.bf16.mxu1 %v1638_v2 }
  0x97   :  { %1467 = vmatpush3.bf16.msra.mxu1 %v1559_v4 }
  0x98   :  { %1468 = vmatprep.subr.bf16.mxu1 %v1638_v2 }
  0x9b   :  { %1469 = vmatpush3.bf16.msra.mxu1 %v1560_v6 }
  0x9c   :  { %1470 = vmatprep.subr.bf16.mxu1 %v1638_v2 }
  0x9f   :  { %1471 = vmatpush3.bf16.msra.mxu1 %v1561_v8 }
  0xa0   :  { %1472 = vmatprep.subr.bf16.mxu1 %v1638_v2 }
  0xa3   :  { %1473 = vmatpush3.bf16.msra.mxu1 %v1562_v10 }
  0xa4   :  { %1474 = vmatprep.subr.bf16.mxu1 %v1638_v2 }
  0xa7   :  { %1475 = vmatpush3.bf16.msra.mxu1 %v1563_v12 }
  0xa8   :  { %1476 = vmatprep.subr.bf16.mxu1 %v1638_v2 }
  0xab   :  { %1477 = vmatpush3.bf16.msra.mxu1 %v1564_v14 }
  0xac   :  { %1478 = vmatprep.subr.bf16.mxu1 %v1638_v2  ;;  %v910_v2 = vcombine.high %v908_v38, %v908_v38 }
  0xae   :  { %v939_v10 = vpack.c.bf16 %v910_v2, %v910_v2 }
  0xaf   :  { %1479 = vmatpush3.bf16.msra.mxu1 %v1565_v16 }
  0xf1   :  { %v1266_v51 = vpop.f32.mrf.mxu0 }
  0xf2   :  { %v1288_v53 = vpop.f32.mrf.mxu1 }
  0xf3   :  { %v1267_v54 = vpop.f32.mrf.mxu0 }
  0xf4   :  { %v1289_v55 = vpop.f32.mrf.mxu1  ;;  %v1268_v60 = vadd.f32 %v1267_v54, %v1266_v51 }
  0xf5   :  { %v1269_v56 = vpop.f32.mrf.mxu0  ;;  %v1290_v22 = vadd.f32 %v1289_v55, %v1288_v53 }
  0xf6   :  { %v1291_v57 = vpop.f32.mrf.mxu1  ;;  %v667_v63 = vadd.f32 %v1268_v60, %v1983_v61 }
  0xf7   :  { %v1270_v58 = vpop.f32.mrf.mxu0 }
  0xf8   :  { %v1292_v59 = vpop.f32.mrf.mxu1  ;;  %v707_v39 = vadd.f32 %v1290_v22, %v667_v63 }
 0x111   :  { %v1310_v23 = vpop.f32.mrf.mxu0 }
 0x112   :  { %v1332_v24 = vpop.f32.mrf.mxu1 }
 0x113   :  { %v1311_v30 = vpop.f32.mrf.mxu0 }
 0x114   :  { %v1312_v40 = vadd.f32 %v1311_v30, %v1310_v23  ;;  %v1333_v43 = vpop.f32.mrf.mxu1 }
 0x115   :  { %v1313_v44 = vpop.f32.mrf.mxu0  ;;  %v1334_v48 = vadd.f32 %v1333_v43, %v1332_v24 }
 0x116   :  { %v747_v45 = vadd.f32 %v1312_v40, %v707_v39  ;;  %v1335_v52 = vpop.f32.mrf.mxu1 }
 0x117   :  { %v1314_v0 = vpop.f32.mrf.mxu0 }
 0x118   :  { %v787_v4 = vadd.f32 %v1334_v48, %v747_v45  ;;  %v1336_v6 = vpop.f32.mrf.mxu1 }
 0x11a   :  { %v792_v8 = vmax.f32 %v787_v4, 0.0 }
 0x11c   :  { %v793_v12 = vpack.c.bf16 %v792_v8, %v792_v8 }
 0x11e   :  { %1461 = vmatmul.mubr.bf16.vlgmr.msra.gmra.mxu0 %v793_v12 }
 0x11f   :  { %1370 = vmatpush3.bf16.msra.mxu0 %v1693_v3  ;;  %1016 = vmatprep.mubr.bf16.mxu0 %v939_v10  ;;  %v911_v3 = vcombine.high %v1963_v1, %v1963_v1 }
 0x120   :  { %1371 = vmatprep.subr.bf16.mxu0 %v1699_v5 }
 0x121   :  { %v925_v5 = vrot.slane %v911_v3, %v1773_v35  ;;  %v2074_v35 = vld [vmem:[#allocation20_spill] sm:$0xff] }
 0x123   :  { %1372 = vmatpush3.bf16.msra.mxu0 %v1705_v7  ;;  %v927_v7 = vcombine.high %v925_v5, %v925_v5 }
 0x124   :  { %1373 = vmatprep.subr.bf16.mxu0 %v1711_v9  ;;  %v938_v9 = vpack.c.bf16 %v908_v38, %v908_v38 }
 0x127   :  { %1374 = vmatpush3.bf16.msra.mxu0 %v1717_v11  ;;  %v943_v11 = vpack.c.bf16 %v927_v7, %v927_v7 }
 0x128   :  { %1375 = vmatprep.subr.bf16.mxu0 %v1723_v13  ;;  %v2065_v13 = vld [vmem:[#allocation11_spill] sm:$0xff] }
 0x12b   :  { %1376 = vmatpush3.bf16.msra.mxu0 %v1729_v15  ;;  %v2066_v15 = vld [vmem:[#allocation12_spill] sm:$0xff] }
 0x12c   :  { %1377 = vmatprep.subr.bf16.mxu0 %v1735_v17  ;;  %v2067_v17 = vld [vmem:[#allocation13_spill] sm:$0xff] }
 0x12f   :  { %1378 = vmatpush3.bf16.msra.mxu0 %v1741_v19  ;;  %v2068_v19 = vld [vmem:[#allocation14_spill] sm:$0xff] }
 0x130   :  { %1379 = vmatprep.subr.bf16.mxu0 %v1747_v21  ;;  %v2069_v21 = vld [vmem:[#allocation15_spill] sm:$0xff] }
 0x133   :  { %1380 = vmatpush3.bf16.msra.mxu0 %v1753_v26  ;;  %v2070_v26 = vld [vmem:[#allocation16_spill] sm:$0xff] }
 0x134   :  { %1381 = vmatprep.subr.bf16.mxu0 %v1759_v28  ;;  %v2071_v28 = vld [vmem:[#allocation17_spill] sm:$0xff] }
 0x137   :  { %1382 = vmatpush3.bf16.msra.mxu0 %v1765_v32  ;;  %v2072_v32 = vld [vmem:[#allocation18_spill] sm:$0xff] }
 0x138   :  { %1383 = vmatprep.subr.bf16.mxu0 %v1771_v34  ;;  %v2073_v34 = vld [vmem:[#allocation19_spill] sm:$0xff] }
 0x13b   :  { %1384 = vmatpush3.bf16.msra.mxu0 %v1779_v37  ;;  %v2075_v37 = vld [vmem:[#allocation21_spill] sm:$0xff] }
 0x13c   :  { %1413 = vmatprep.subr.bf16.mxu0 %v1789_v42  ;;  %v942_v42 = vpack.c.bf16 %v925_v5, %v925_v5 }
 0x13e   :  { %1017 = vmatmul.mubr.bf16.vlgmr.msra.gmra.mxu0 %v938_v9 }
 0x13f   :  { %1414 = vmatpush3.bf16.msra.mxu0 %v1796_v49  ;;  %1096 = vmatprep.mubr.bf16.mxu0 %v943_v11  ;;  %v1363_v49 = vpop.f32.mrf.mxu1 }
 0x140   :  { %1415 = vmatprep.subr.bf16.mxu0 %v2065_v13 }
 0x141   :  { %v1364_v14 = vpop.f32.mrf.mxu1 }
 0x142   :  { %v1365_v16 = vadd.f32 %v1364_v14, %v1363_v49 }
 0x143   :  { %1416 = vmatpush3.bf16.msra.mxu0 %v2066_v15  ;;  %v1366_v18 = vpop.f32.mrf.mxu1 }
 0x144   :  { %1417 = vmatprep.subr.bf16.mxu0 %v2067_v17  ;;  %v979_v53 = vadd.f32 %v1365_v16, %v1983_v61 }
 0x145   :  { %v1367_v20 = vpop.f32.mrf.mxu1 }
 0x147   :  { %1418 = vmatpush3.bf16.msra.mxu0 %v2068_v19 }
 0x148   :  { %1419 = vmatprep.subr.bf16.mxu0 %v2069_v21 }
 0x14b   :  { %1420 = vmatpush3.bf16.msra.mxu0 %v2070_v26 }
 0x14c   :  { %1421 = vmatprep.subr.bf16.mxu0 %v2071_v28 }
 0x14f   :  { %1422 = vmatpush3.bf16.msra.mxu0 %v2072_v32 }
 0x150   :  { %1423 = vmatprep.subr.bf16.mxu0 %v2073_v34 }
 0x152   :  { %v1407_v25 = vpop.f32.mrf.mxu1 }
 0x153   :  { %1424 = vmatpush3.bf16.msra.mxu0 %v2074_v35 }
 0x154   :  { %1425 = vmatprep.subr.bf16.mxu0 %v2075_v37  ;;  %v1408_v27 = vpop.f32.mrf.mxu1 }
 0x155   :  { %v1409_v31 = vadd.f32 %v1408_v27, %v1407_v25 }
 0x156   :  { %v1410_v1 = vpop.f32.mrf.mxu1 }
 0x157   :  { %1426 = vmatpush3.bf16.msra.mxu0 %v1865_v47  ;;  %v1241_v47 = vld [vmem:[%s2040_s5] ss:$0 sm:$0xff]  ;;  %s1640_s5 = smov [#allocation5]  }
 0x158   :  { %1427 = vmatprep.subr.bf16.mxu0 %v1871_v50  ;;  %v1411_v33 = vpop.f32.mrf.mxu1  ;;  %s1153_s2 = sshll.u32 %s1640_s5, 4  ;;  %s1154_s2 = int_to_ptr.vmem [resolvable:$true] %s1153_s2 }
 0x159   :  { %s1588_s8 = scalar_lea.vmem %s1154_s2, 32  ;;  %p1593_p6 = scmp.lt.s32.totalorder %s1154_s2, %s1154_s2 }
 0x15a   :  { %p1589_p5 = scmp.ne.s32.totalorder %s1154_s2, %s1588_s8  ;;  %p1594_p7 = scmp.lt.s32.totalorder %s1588_s8, %s1588_s8 }
 0x15b   :  { %1428 = vmatpush3.bf16.msra.mxu0 %v1880_v29 }
 0x15c   :  { %p1595_p8 = por %p1594_p7, %p1593_p6 }
 0x15e   :  { %1097 = vmatmul.mubr.bf16.vlgmr.msra.gmra.mxu0 %v942_v42  ;;  %p1596_p9 = pnand %p1595_p8, %p1589_p5 }
 0x1de   :  { %v882_v36 = vpop.f32.mrf.mxu0 }
 0x1df   :  { %v883_v50 = vadd.f32 %v1241_v47, %v882_v36 }
 0x1e0   :  { %v1462_v41 = vpop.f32.mrf.mxu0 }
 0x1e1   :  { %889 = vst.msk [vmem:[#allocation5] sm:$0x3] %vm888_vm1, %v883_v50 }
 0x1e2   :  { %v885_v29 = vpop.f32.mrf.mxu0 }
 0x1e4   :  { %v1463_v46 = vpop.f32.mrf.mxu0 }
 0x1fe   :  { %v1385_v51 = vpop.f32.mrf.mxu0 }
 0x200   :  { %v1386_v54 = vpop.f32.mrf.mxu0 }
 0x201   :  { %v1387_v55 = vadd.f32 %v1386_v54, %v1385_v51 }
 0x202   :  { %v1388_v56 = vpop.f32.mrf.mxu0 }
 0x203   :  { %v1019_v57 = vadd.f32 %v1387_v55, %v979_v53 }
 0x204   :  { %v1389_v58 = vpop.f32.mrf.mxu0 }
 0x205   :  { %v1059_v59 = vadd.f32 %v1409_v31, %v1019_v57 }
 0x21e   :  { %v1429_v60 = vpop.f32.mrf.mxu0 }
 0x220   :  { %v1430_v62 = vpop.f32.mrf.mxu0 }
 0x221   :  { %v1431_v63 = vadd.f32 %v1430_v62, %v1429_v60 }
 0x222   :  { %v1432_v22 = vpop.f32.mrf.mxu0 }
 0x223   :  { %v1099_v23 = vadd.f32 %v1431_v63, %v1059_v59 }
 0x224   :  { %v1433_v24 = vpop.f32.mrf.mxu0 }
 0x225   :  { %v1104_v30 = vmax.f32 %v1099_v23, 0.0 }
 0x227   :  { %v1105_v38 = vpack.c.bf16 %v1104_v30, %v1104_v30 }
 0x229   :  { %1481 = vmatmul.mubr.bf16.vlgmr.msra.gmra.mxu1 %v1105_v38 }
 0x22a   :  { %1599 = shalt.err (!%p1596_p9)
}
 0x22b   :  { %1156 = dma.vmem_to_hbm [thread:$0]  %s1154_s2, 32, %s2041_s6, [#allocation4]  }
 0x22c   :  { %s1641_s0 = smov [#allocation6]  }
 0x22d   :  { %s1163_s11 = sshll.u32 %s1641_s0, 4  ;;  %s1164_s11 = int_to_ptr.vmem [resolvable:$true] %s1163_s11 }
 0x22e   :  { %s1608_s12 = scalar_lea.vmem %s1164_s11, 32  ;;  %p1613_p11 = scmp.lt.s32.totalorder %s1164_s11, %s1164_s11 }
 0x22f   :  { %p1609_p10 = scmp.ne.s32.totalorder %s1164_s11, %s1608_s12  ;;  %p1614_p12 = scmp.lt.s32.totalorder %s1608_s12, %s1608_s12 }
 0x231   :  { %p1615_p13 = por %p1614_p12, %p1613_p11 }
 0x233   :  { %p1616_p0 = pnand %p1615_p13, %p1609_p10 }
 0x2e9   :  { %v1140_v61 = vpop.f32.mrf.mxu1 }
 0x2ea   :  { %v1141_v39 = vadd.f32 %v1241_v47, %v1140_v61 }
 0x2eb   :  { %v1482_v40 = vpop.f32.mrf.mxu1 }
 0x2ec   :  { %1146 = vst.msk [vmem:[#allocation6] sm:$0x3] %vm888_vm1, %v1141_v39 }
 0x2ed   :  { %v1143_v43 = vpop.f32.mrf.mxu1 }
 0x2ee   :  { %1619 = shalt.err (!%p1616_p0)
}
 0x2ef   :  { %1166 = dma.vmem_to_hbm [thread:$0]  %s1164_s11, 32, %s2042_s7, [#allocation7]   ;;  %v1483_v44 = vpop.f32.mrf.mxu1 }
 0x2f0   :  { %1630 = dma.done.wait [#allocation4], 32  }
 0x2f1   :  { %1631 = vsyncadd [#allocation4], 4294967264 }
 0x2f2   :  { %1632 = dma.done.wait [#allocation7], 32  }
 0x2f3   :  { %1633 = vsyncadd [#allocation7], 4294967264 }
 0x2f4   :  { %1173 = vsyncpa [#allocation3], 1 }
 0x2f5   :  { %1174 = vsyncpa [#allocation4], 1 }
 0x2f6   :  { %1175 = vsyncpa [#allocation7], 1 }

</bundles_post_ra>
